<compile_context>
chip_gen: v7x
topology: tpu7x:2x2x1
jax: 0.10.0
libtpu: 0.0.40
codegen_flags: <defaults>
</compile_context>

<pallas_src>
import jax
import jax.numpy as jnp
from jax.experimental import pallas as pl
from jax.experimental.pallas import tpu as pltpu


def _round_up(n, m):
    return ((n + m - 1) // m) * m


def dqn_kernel(x_ref, w1_ref, b1_ref, w2_ref, b2_ref, w3_ref, b3_ref, o_ref):
    bf16 = jnp.bfloat16
    # layer 1: bf16 matmul on the MXU (K = n_obs < 128 is masked by Mosaic),
    # f32 accumulate, f32 bias+ReLU epilogue, bf16 materialized intermediate.
    h1 = jnp.dot(x_ref[...].astype(bf16), w1_ref[...].astype(bf16),
                 preferred_element_type=jnp.float32)
    h1 = jnp.maximum(h1 + b1_ref[...], 0.0).astype(bf16)
    # layer 2
    h2 = jnp.dot(h1, w2_ref[...].astype(bf16),
                 preferred_element_type=jnp.float32)
    h2 = jnp.maximum(h2 + b2_ref[...], 0.0).astype(bf16)
    # layer 3 (no activation) — narrow (n_actions-wide) store; tiny HBM writeback.
    out = jnp.dot(h2, w3_ref[...].astype(bf16),
                  preferred_element_type=jnp.float32) + b3_ref[...]
    o_ref[...] = out.astype(o_ref.dtype)


def dqn_forward(x, w1, b1, w2, b2, w3, b3, *, block_b=4096):
    """Forward pass of the DQN.

    x:  [B, n_obs] float32
    w*: [in, out]  (transpose of the PyTorch weight layout)
    b*: [out] or [1, out]
    returns [B, n_actions] float32 Q-values.
    """
    B, n_obs = x.shape
    hidden = w1.shape[1]
    n_actions = w3.shape[1]
    f32 = jnp.float32

    # Biases as (1, out) f32 rows (no-op if already in that shape/dtype).
    b1 = jnp.asarray(b1, f32).reshape(1, hidden)
    b2 = jnp.asarray(b2, f32).reshape(1, hidden)
    b3 = jnp.asarray(b3, f32).reshape(1, n_actions)

    # Batch tile selection:
    #  * B <= 256: single grid step, zero wrapper-side pad/slice ops (latency path).
    #  * B  > 256: at least two grid steps (so v7x's two TensorCores can split the
    #    "parallel" batch axis), capped at block_b rows to bound per-step VMEM.
    if B <= 256:
        tb = B
    else:
        tb = min(block_b, _round_up(-(-B // 2), 8))
    b_pad = _round_up(B, tb)

    if b_pad == B:
        x_in = x
    else:
        # Zero-padded rows produce relu(bias)-derived garbage that is sliced off below.
        x_in = jnp.zeros((b_pad, n_obs), x.dtype).at[:B, :].set(x)

    grid = (b_pad // tb,)

    out = pl.pallas_call(
        dqn_kernel,
        out_shape=jax.ShapeDtypeStruct((b_pad, n_actions), f32),
        grid_spec=pltpu.PrefetchScalarGridSpec(
            num_scalar_prefetch=0,
            grid=grid,
            in_specs=[
                pl.BlockSpec((tb, n_obs), lambda i: (i, 0)),          # x tile (pipelined)
                pl.BlockSpec((n_obs, hidden), lambda i: (0, 0)),      # w1 (VMEM-resident)
                pl.BlockSpec((1, hidden), lambda i: (0, 0)),          # b1
                pl.BlockSpec((hidden, hidden), lambda i: (0, 0)),     # w2
                pl.BlockSpec((1, hidden), lambda i: (0, 0)),          # b2
                pl.BlockSpec((hidden, n_actions), lambda i: (0, 0)),  # w3 (unpadded)
                pl.BlockSpec((1, n_actions), lambda i: (0, 0)),       # b3 (unpadded)
            ],
            out_specs=pl.BlockSpec((tb, n_actions), lambda i: (i, 0)),
        ),
        compiler_params=pltpu.CompilerParams(
            dimension_semantics=("parallel",),
            # Fits tb=4096 (≈15 MiB worst case incl. double buffers) on every gen:
            # above v5e's 16 MiB scoped default, at/below v6e/v7x defaults.
            vmem_limit_bytes=32 * 1024 * 1024,
        ),
    )(x_in, w1, b1, w2, b2, w3, b3)

    return out if b_pad == B else out[:B]


def init_linear_params(key, fan_in, fan_out):
    """Deterministic init mimicking PyTorch nn.Linear default (uniform +-1/sqrt(fan_in))."""
    kw, kb = jax.random.split(key)
    bound = 1.0 / jnp.sqrt(jnp.float32(fan_in))
    w = jax.random.uniform(kw, (fan_in, fan_out), jnp.float32, -bound, bound)
    b = jax.random.uniform(kb, (1, fan_out), jnp.float32, -bound, bound)
    return w, b


def _reference(x, w1, b1, w2, b2, w3, b3):
    """Mixed-precision reference matching the kernel math (bf16 matmuls, f32 accum)."""
    bf16 = jnp.bfloat16
    h = jnp.maximum(
        jnp.dot(x.astype(bf16), w1.astype(bf16),
                preferred_element_type=jnp.float32) + b1, 0.0).astype(bf16)
    h = jnp.maximum(
        jnp.dot(h, w2.astype(bf16),
                preferred_element_type=jnp.float32) + b2, 0.0).astype(bf16)
    return jnp.dot(h, w3.astype(bf16),
                   preferred_element_type=jnp.float32) + b3


if __name__ == "__main__":
    n_observations = 32   # small synthetic obs dim
    n_actions = 4         # e.g. pacman moves
    hidden = 128          # fixed by the module

    key = jax.random.PRNGKey(0)
    kx, k1, k2, k3, kx2 = jax.random.split(key, 5)

    w1, b1 = init_linear_params(k1, n_observations, hidden)
    w2, b2 = init_linear_params(k2, hidden, hidden)
    w3, b3 = init_linear_params(k3, hidden, n_actions)

    # --- small-batch / latency path (single grid step, zero wrapper pad/slice) ---
    batch = 8
    x = jax.random.normal(kx, (batch, n_observations), jnp.float32)
    out = jax.block_until_ready(dqn_forward(x, w1, b1, w2, b2, w3, b3))
    assert out.shape == (batch, n_actions)
    ref = _reference(x, w1, b1, w2, b2, w3, b3)
    assert jnp.allclose(out, ref, atol=1e-2, rtol=1e-2)

    # full-f32 sanity check with looser tolerance (bf16 rounding of inputs/weights)
    ref32 = jnp.maximum(x @ w1 + b1, 0.0)
    ref32 = jnp.maximum(ref32 @ w2 + b2, 0.0)
    ref32 = ref32 @ w3 + b3
    assert jnp.allclose(out, ref32, atol=5e-2, rtol=5e-2)

    # --- larger-batch path (multi-step grid, exercises batch padding + slicing) ---
    batch2 = 300  # > 256 and not a multiple of the tile -> padded rows get sliced off
    x2 = jax.random.normal(kx2, (batch2, n_observations), jnp.float32)
    out2 = jax.block_until_ready(dqn_forward(x2, w1, b1, w2, b2, w3, b3))
    assert out2.shape == (batch2, n_actions)
    ref2 = _reference(x2, w1, b1, w2, b2, w3, b3)
    assert jnp.allclose(out2, ref2, atol=1e-2, rtol=1e-2)

    print("KERNEL_OK")
</pallas_src>

<mosaic_0001>
module attributes {stable_mosaic.version = 11 : i64} {
  func.func @dqn_kernel(%arg0: i32, %arg1: memref<8x32xf32, #tpu.memory_space<vmem>>, %arg2: memref<32x128xf32, #tpu.memory_space<vmem>>, %arg3: memref<1x128xf32, #tpu.memory_space<vmem>>, %arg4: memref<128x128xf32, #tpu.memory_space<vmem>>, %arg5: memref<1x128xf32, #tpu.memory_space<vmem>>, %arg6: memref<128x4xf32, #tpu.memory_space<vmem>>, %arg7: memref<1x4xf32, #tpu.memory_space<vmem>>, %arg8: memref<8x4xf32, #tpu.memory_space<vmem>>) attributes {dimension_semantics = [#tpu.dimension_semantics<parallel>], iteration_bounds = array<i64: 1>, scalar_prefetch = 0 : i64, scratch_operands = 0 : i64, tpu.core_type = #tpu.core_type<tc>, window_params = [{transform_indices = @transform_0, window_bounds = array<i64: 8, 32>}, {pipeline_mode = #tpu.pipeline_mode<synchronous>, transform_indices = @transform_1, window_bounds = array<i64: 32, 128>}, {pipeline_mode = #tpu.pipeline_mode<synchronous>, transform_indices = @transform_2, window_bounds = array<i64: 1, 128>}, {pipeline_mode = #tpu.pipeline_mode<synchronous>, transform_indices = @transform_3, window_bounds = array<i64: 128, 128>}, {pipeline_mode = #tpu.pipeline_mode<synchronous>, transform_indices = @transform_4, window_bounds = array<i64: 1, 128>}, {pipeline_mode = #tpu.pipeline_mode<synchronous>, transform_indices = @transform_5, window_bounds = array<i64: 128, 4>}, {pipeline_mode = #tpu.pipeline_mode<synchronous>, transform_indices = @transform_6, window_bounds = array<i64: 1, 4>}, {transform_indices = @transform_7, window_bounds = array<i64: 8, 4>}]} {
    %c0 = arith.constant 0 : index
    %c0_0 = arith.constant 0 : index
    %0 = vector.load %arg1[%c0, %c0_0] : memref<8x32xf32, #tpu.memory_space<vmem>>, vector<8x32xf32>
    %1 = arith.truncf %0 : vector<8x32xf32> to vector<8x32xbf16>
    %c0_1 = arith.constant 0 : index
    %c0_2 = arith.constant 0 : index
    %2 = vector.load %arg2[%c0_1, %c0_2] : memref<32x128xf32, #tpu.memory_space<vmem>>, vector<32x128xf32>
    %3 = arith.truncf %2 : vector<32x128xf32> to vector<32x128xbf16>
    %cst = arith.constant dense<0.000000e+00> : vector<8x128xf32>
    %4 = tpu.matmul %1, %3, %cst {dimension_numbers = #tpu.dot_dimension_numbers<[1], [0], [0], [1], [0, 0, 1, 1], [], []>} : vector<8x32xbf16>, vector<32x128xbf16>, vector<8x128xf32> -> vector<8x128xf32>
    %c0_3 = arith.constant 0 : index
    %c0_4 = arith.constant 0 : index
    %5 = vector.load %arg3[%c0_3, %c0_4] : memref<1x128xf32, #tpu.memory_space<vmem>>, vector<1x128xf32>
    %6 = vector.broadcast %5 : vector<1x128xf32> to vector<8x128xf32>
    %7 = arith.addf %4, %6 : vector<8x128xf32>
    %cst_5 = arith.constant 0.000000e+00 : f32
    %8 = vector.broadcast %cst_5 : f32 to vector<8x128xf32>
    %9 = arith.maximumf %7, %8 : vector<8x128xf32>
    %10 = arith.truncf %9 : vector<8x128xf32> to vector<8x128xbf16>
    %c0_6 = arith.constant 0 : index
    %c0_7 = arith.constant 0 : index
    %11 = vector.load %arg4[%c0_6, %c0_7] : memref<128x128xf32, #tpu.memory_space<vmem>>, vector<128x128xf32>
    %12 = arith.truncf %11 : vector<128x128xf32> to vector<128x128xbf16>
    %cst_8 = arith.constant dense<0.000000e+00> : vector<8x128xf32>
    %13 = tpu.matmul %10, %12, %cst_8 {dimension_numbers = #tpu.dot_dimension_numbers<[1], [0], [0], [1], [0, 0, 1, 1], [], []>} : vector<8x128xbf16>, vector<128x128xbf16>, vector<8x128xf32> -> vector<8x128xf32>
    %c0_9 = arith.constant 0 : index
    %c0_10 = arith.constant 0 : index
    %14 = vector.load %arg5[%c0_9, %c0_10] : memref<1x128xf32, #tpu.memory_space<vmem>>, vector<1x128xf32>
    %15 = vector.broadcast %14 : vector<1x128xf32> to vector<8x128xf32>
    %16 = arith.addf %13, %15 : vector<8x128xf32>
    %cst_11 = arith.constant 0.000000e+00 : f32
    %17 = vector.broadcast %cst_11 : f32 to vector<8x128xf32>
    %18 = arith.maximumf %16, %17 : vector<8x128xf32>
    %19 = arith.truncf %18 : vector<8x128xf32> to vector<8x128xbf16>
    %c0_12 = arith.constant 0 : index
    %c0_13 = arith.constant 0 : index
    %20 = vector.load %arg6[%c0_12, %c0_13] : memref<128x4xf32, #tpu.memory_space<vmem>>, vector<128x4xf32>
    %21 = arith.truncf %20 : vector<128x4xf32> to vector<128x4xbf16>
    %cst_14 = arith.constant dense<0.000000e+00> : vector<8x4xf32>
    %22 = tpu.matmul %19, %21, %cst_14 {dimension_numbers = #tpu.dot_dimension_numbers<[1], [0], [0], [1], [0, 0, 1, 1], [], []>} : vector<8x128xbf16>, vector<128x4xbf16>, vector<8x4xf32> -> vector<8x4xf32>
    %c0_15 = arith.constant 0 : index
    %c0_16 = arith.constant 0 : index
    %23 = vector.load %arg7[%c0_15, %c0_16] : memref<1x4xf32, #tpu.memory_space<vmem>>, vector<1x4xf32>
    %24 = vector.broadcast %23 : vector<1x4xf32> to vector<8x4xf32>
    %25 = arith.addf %22, %24 : vector<8x4xf32>
    %c0_17 = arith.constant 0 : index
    %c0_18 = arith.constant 0 : index
    %26 = vector.load %arg8[%c0_17, %c0_18] : memref<8x4xf32, #tpu.memory_space<vmem>>, vector<8x4xf32>
    tpu.vector_store %arg8[%c0_17, %c0_18], %25 {strides = array<i32>} : memref<8x4xf32, #tpu.memory_space<vmem>>, vector<8x4xf32>,
    return
  }
  func.func @transform_0(%arg0: i32) -> (i32, i32) {
    %c0_i32 = arith.constant 0 : i32
    %c0_i32_0 = arith.constant 0 : i32
    return %arg0, %c0_i32 : i32, i32
  }
  func.func @transform_1(%arg0: i32) -> (i32, i32) {
    %c0_i32 = arith.constant 0 : i32
    %c0_i32_0 = arith.constant 0 : i32
    %c0_i32_1 = arith.constant 0 : i32
    return %c0_i32, %c0_i32_0 : i32, i32
  }
  func.func @transform_2(%arg0: i32) -> (i32, i32) {
    %c0_i32 = arith.constant 0 : i32
    %c0_i32_0 = arith.constant 0 : i32
    %c0_i32_1 = arith.constant 0 : i32
    return %c0_i32, %c0_i32_0 : i32, i32
  }
  func.func @transform_3(%arg0: i32) -> (i32, i32) {
    %c0_i32 = arith.constant 0 : i32
    %c0_i32_0 = arith.constant 0 : i32
    %c0_i32_1 = arith.constant 0 : i32
    return %c0_i32, %c0_i32_0 : i32, i32
  }
  func.func @transform_4(%arg0: i32) -> (i32, i32) {
    %c0_i32 = arith.constant 0 : i32
    %c0_i32_0 = arith.constant 0 : i32
    %c0_i32_1 = arith.constant 0 : i32
    return %c0_i32, %c0_i32_0 : i32, i32
  }
  func.func @transform_5(%arg0: i32) -> (i32, i32) {
    %c0_i32 = arith.constant 0 : i32
    %c0_i32_0 = arith.constant 0 : i32
    %c0_i32_1 = arith.constant 0 : i32
    return %c0_i32, %c0_i32_0 : i32, i32
  }
  func.func @transform_6(%arg0: i32) -> (i32, i32) {
    %c0_i32 = arith.constant 0 : i32
    %c0_i32_0 = arith.constant 0 : i32
    %c0_i32_1 = arith.constant 0 : i32
    return %c0_i32, %c0_i32_0 : i32, i32
  }
  func.func @transform_7(%arg0: i32) -> (i32, i32) {
    %c0_i32 = arith.constant 0 : i32
    %c0_i32_0 = arith.constant 0 : i32
    return %arg0, %c0_i32 : i32, i32
  }
}

</mosaic_0001>

<bundles_post_ra>
// kernel: tpu_custom_call.1
= control target key start
LH: loop header
LB: loop body
LE: loop exit
PB: predicated region body
PF: predicated region fallthrough
CT: control target
= control target key end

     0   :  { %12 = vsyncpa [#allocation3], 0  ;;  %s355_s24 = smov [#allocation2]   ;;  %s547_s0 = inlined_call_operand.vmem [shape: f32[8,32], index: 0, kind: input, shape index: {}]   ;;  %s548_s1 = inlined_call_operand.hbm [shape: f32[32,128], index: 1, kind: input, shape index: {}]   ;;  %s549_s2 = inlined_call_operand.vmem [shape: f32[1,128], index: 2, kind: input, shape index: {}]   ;;  %s550_s3 = inlined_call_operand.vmem [shape: f32[128,128], index: 3, kind: input, shape index: {}]   ;;  %s551_s4 = inlined_call_operand.vmem [shape: f32[1,128], index: 4, kind: input, shape index: {}]   ;;  %s552_s5 = inlined_call_operand.vmem [shape: f32[128,4], index: 5, kind: input, shape index: {}]   ;;  %s553_s6 = inlined_call_operand.vmem [shape: f32[1,4], index: 6, kind: input, shape index: {}]   ;;  %s554_s7 = inlined_call_operand.vmem [shape: f32[8,4], index: 7, kind: output, shape index: {}]  }
   0x1   :  { %s20_s25 = sshll.u32 %s355_s24, 4  ;;  %s331_s28 = scalar_lea.hbm %s548_s1, 512  ;;  %s21_s25 = int_to_ptr.vmem [resolvable:$true] %s20_s25 }
   0x2   :  { %p332_p0 = scmp.ne.s32.totalorder %s548_s1, %s331_s28  ;;  %p335_p1 = scmp.lt.u32.totalorder %s331_s28, %s548_s1 }
   0x4   :  { %p337_p2 = pnand %p335_p1, %p332_p0 }
   0x6   :  { %340 = shalt.err (!%p337_p2)
}
   0x7   :  { %s341_s10 = scalar_lea.vmem %s21_s25, 512  ;;  %p346_p4 = scmp.lt.s32.totalorder %s21_s25, %s21_s25 }
   0x8   :  { %p342_p3 = scmp.ne.s32.totalorder %s21_s25, %s341_s10  ;;  %p347_p5 = scmp.lt.s32.totalorder %s341_s10, %s341_s10 }
   0xa   :  { %p348_p6 = por %p347_p5, %p346_p4 }
   0xc   :  { %p349_p7 = pnand %p348_p6, %p342_p3 }
   0xe   :  { %352 = shalt.err (!%p349_p7)
}
   0xf   :  { %s356_s11 = smov 128   ;;  %s357_s12 = smov 8  }
  0x10   :  { %26 = dma.hbm_to_vmem [thread:$0]  %s548_s1, 512, %s21_s25, [#allocation3], %s356_s11, %s356_s11, %s357_s12  }
  0x11   :  { %353 = dma.done.wait [#allocation3], 512  }
  0x12   :  { %354 = vsyncadd [#allocation3], 4294966784  ;;  %v358_v0 = vmov 0.0   ;;  %vm359_vm0 = vmmov 0   ;;  %v43_v1 = vld [vmem:[#allocation2] sm:$0xff]  ;;  %v44_v2 = vld [vmem:[#allocation2 + $0x8] sm:$0xff] }
  0x13   :  { %278 = vmatprep.subr.bf16.mxu0 %v358_v0  ;;  %282 = vmatprep.mubr.msk.bf16.mxu0 %vm359_vm0, %v358_v0  ;;  %v45_v3 = vld [vmem:[#allocation2 + $0x10] sm:$0xff]  ;;  %v47_v4 = vpack.c.bf16 %v44_v2, %v43_v1  ;;  %v46_v5 = vld [vmem:[#allocation2 + $0x18] sm:$0xff]  ;;  %v102_v6 = vld [vmem:[%s550_s3] sm:$0xff]  ;;  %vm56_vm1 = vcmask 261120   ;;  %vm246_vm2 = vcmask 31744  }
  0x14   :  { %286 = vmatprep.subr.bf16.mxu1 %v358_v0  ;;  %302 = vmatprep.mubr.msk.bf16.mxu1 %vm359_vm0, %v358_v0  ;;  %v103_v7 = vld [vmem:[%s550_s3 + $0x8] sm:$0xff]  ;;  %v104_v8 = vld [vmem:[%s550_s3 + $0x10] sm:$0xff]  ;;  %v105_v9 = vld [vmem:[%s550_s3 + $0x18] sm:$0xff]  ;;  %v48_v10 = vpack.c.bf16 %v46_v5, %v45_v3 }
  0x15   :  { %279 = vmatpush3.bf16.msra.mxu0 %v47_v4  ;;  %v41_v11 = vld [vmem:[%s547_s0] sm:$0xff]  ;;  %v118_v12 = vpack.c.bf16 %v103_v7, %v102_v6  ;;  %v119_v13 = vpack.c.bf16 %v105_v9, %v104_v8  ;;  %v107_v16 = vld [vmem:[%s550_s3 + $0x28] sm:$0xff]  ;;  %v108_v18 = vld [vmem:[%s550_s3 + $0x30] sm:$0xff] }
  0x16   :  { %280 = vmatprep.subr.bf16.mxu0 %v358_v0  ;;  %v42_v14 = vpack.c.bf16 %v41_v11, %v41_v11  ;;  %v106_v15 = vld [vmem:[%s550_s3 + $0x20] sm:$0xff]  ;;  %v109_v19 = vld [vmem:[%s550_s3 + $0x38] sm:$0xff]  ;;  %v111_v22 = vld [vmem:[%s550_s3 + $0x48] sm:$0xff] }
  0x17   :  { %287 = vmatpush3.bf16.msra.mxu1 %v118_v12  ;;  %v120_v17 = vpack.c.bf16 %v107_v16, %v106_v15  ;;  %v121_v20 = vpack.c.bf16 %v109_v19, %v108_v18  ;;  %v110_v21 = vld [vmem:[%s550_s3 + $0x40] sm:$0xff]  ;;  %v112_v24 = vld [vmem:[%s550_s3 + $0x50] sm:$0xff]  ;;  %v113_v25 = vld [vmem:[%s550_s3 + $0x58] sm:$0xff] }
  0x18   :  { %288 = vmatprep.subr.bf16.mxu1 %v358_v0  ;;  %v122_v23 = vpack.c.bf16 %v111_v22, %v110_v21  ;;  %v123_v26 = vpack.c.bf16 %v113_v25, %v112_v24  ;;  %v114_v27 = vld [vmem:[%s550_s3 + $0x60] sm:$0xff]  ;;  %v115_v28 = vld [vmem:[%s550_s3 + $0x68] sm:$0xff]  ;;  %v116_v30 = vld [vmem:[%s550_s3 + $0x70] sm:$0xff] }
  0x19   :  { %281 = vmatpush3.bf16.msra.mxu0 %v48_v10  ;;  %v124_v29 = vpack.c.bf16 %v115_v28, %v114_v27  ;;  %v117_v31 = vld [vmem:[%s550_s3 + $0x78] sm:$0xff]  ;;  %v175_v33 = vld [vmem:[%s552_s5] sm:$0xff]  ;;  %v176_v34 = vld [vmem:[%s552_s5 + $0x8] sm:$0xff] }
  0x1a   :  { %306 = vmatprep.subr.bf16.mxu0 %v358_v0  ;;  %v125_v32 = vpack.c.bf16 %v117_v31, %v116_v30  ;;  %v177_v35 = vld [vmem:[%s552_s5 + $0x10] sm:$0xff]  ;;  %v191_v36 = vpack.c.bf16 %v176_v34, %v175_v33  ;;  %v178_v37 = vld [vmem:[%s552_s5 + $0x18] sm:$0xff]  ;;  %v179_v39 = vld [vmem:[%s552_s5 + $0x20] sm:$0xff] }
  0x1b   :  { %289 = vmatpush3.bf16.msra.mxu1 %v119_v13  ;;  %v192_v38 = vpack.c.bf16 %v178_v37, %v177_v35  ;;  %v180_v40 = vld [vmem:[%s552_s5 + $0x28] sm:$0xff]  ;;  %v181_v42 = vld [vmem:[%s552_s5 + $0x30] sm:$0xff]  ;;  %v182_v43 = vld [vmem:[%s552_s5 + $0x38] sm:$0xff] }
  0x1c   :  { %283 = vmatmul.mubr.msk.bf16.vlgmr.msra.gmra.mrb[0].mxu0 %vm56_vm1, %v42_v14  ;;  %290 = vmatprep.subr.bf16.mxu1 %v358_v0  ;;  %v193_v41 = vpack.c.bf16 %v180_v40, %v179_v39  ;;  %v194_v44 = vpack.c.bf16 %v182_v43, %v181_v42  ;;  %v183_v45 = vld [vmem:[%s552_s5 + $0x40] sm:$0xff]  ;;  %v184_v46 = vld [vmem:[%s552_s5 + $0x48] sm:$0xff]  ;;  %v185_v48 = vld [vmem:[%s552_s5 + $0x50] sm:$0xff] }
  0x1d   :  { %322 = vmatprep.mubr.msk.bf16.mxu0 %vm359_vm0, %v358_v0  ;;  %307 = vmatpush3.bf16.msra.mxu0 %v191_v36  ;;  %v195_v47 = vpack.c.bf16 %v184_v46, %v183_v45  ;;  %v186_v49 = vld [vmem:[%s552_s5 + $0x58] sm:$0xff]  ;;  %v253_v51 = vld [vmem:[%s549_s2] ss:$0 sm:$0xff]  ;;  %v188_v60 = vld [vmem:[%s552_s5 + $0x68] sm:$0xff] }
  0x1e   :  { %308 = vmatprep.subr.bf16.mxu0 %v358_v0  ;;  %v196_v50 = vpack.c.bf16 %v186_v49, %v185_v48  ;;  %v187_v59 = vld [vmem:[%s552_s5 + $0x60] sm:$0xff]  ;;  %v189_v62 = vld [vmem:[%s552_s5 + $0x70] sm:$0xff]  ;;  %v190_v63 = vld [vmem:[%s552_s5 + $0x78] sm:$0xff] }
  0x1f   :  { %291 = vmatpush3.bf16.msra.mxu1 %v120_v17  ;;  %v197_v61 = vpack.c.bf16 %v188_v60, %v187_v59  ;;  %v198_v1 = vpack.c.bf16 %v190_v63, %v189_v62  ;;  %v255_v2 = vld [vmem:[%s551_s4] ss:$0 sm:$0xff] }
  0x20   :  { %292 = vmatprep.subr.bf16.mxu1 %v358_v0  ;;  %v256_v9 = vld [vmem:[%s553_s6] ss:$0 sm:$0xff] }
  0x21   :  { %309 = vmatpush3.bf16.msra.mxu0 %v192_v38 }
  0x22   :  { %310 = vmatprep.subr.bf16.mxu0 %v358_v0 }
  0x23   :  { %293 = vmatpush3.bf16.msra.mxu1 %v121_v20 }
  0x24   :  { %294 = vmatprep.subr.bf16.mxu1 %v358_v0 }
  0x25   :  { %311 = vmatpush3.bf16.msra.mxu0 %v193_v41 }
  0x26   :  { %312 = vmatprep.subr.bf16.mxu0 %v358_v0 }
  0x27   :  { %295 = vmatpush3.bf16.msra.mxu1 %v122_v23 }
  0x28   :  { %296 = vmatprep.subr.bf16.mxu1 %v358_v0 }
  0x29   :  { %313 = vmatpush3.bf16.msra.mxu0 %v194_v44 }
  0x2a   :  { %314 = vmatprep.subr.bf16.mxu0 %v358_v0 }
  0x2b   :  { %297 = vmatpush3.bf16.msra.mxu1 %v123_v26 }
  0x2c   :  { %298 = vmatprep.subr.bf16.mxu1 %v358_v0 }
  0x2d   :  { %315 = vmatpush3.bf16.msra.mxu0 %v195_v47 }
  0x2e   :  { %316 = vmatprep.subr.bf16.mxu0 %v358_v0 }
  0x2f   :  { %299 = vmatpush3.bf16.msra.mxu1 %v124_v29 }
  0x30   :  { %300 = vmatprep.subr.bf16.mxu1 %v358_v0 }
  0x31   :  { %317 = vmatpush3.bf16.msra.mxu0 %v196_v50 }
  0x32   :  { %318 = vmatprep.subr.bf16.mxu0 %v358_v0 }
  0x33   :  { %301 = vmatpush3.bf16.msra.mxu1 %v125_v32 }
  0x35   :  { %319 = vmatpush3.bf16.msra.mxu0 %v197_v61 }
  0x36   :  { %320 = vmatprep.subr.bf16.mxu0 %v358_v0 }
  0x39   :  { %321 = vmatpush3.bf16.msra.mxu0 %v198_v1 }
  0xef   :  { %v94_v52 = vpop.f32.mrb[0].mxu0 }
  0xf0   :  { %v95_v53 = vadd.f32 %v253_v51, %v94_v52  ;;  %v284_v54 = vpop.f32.mrb[1].mxu0 }
  0xf1   :  { %v97_v55 = vpop.f32.mrb[2].mxu0 }
  0xf2   :  { %v100_v56 = vmax.f32 %v95_v53, 0.0  ;;  %v285_v57 = vpop.f32.mrb[3].mxu0 }
  0xf4   :  { %v101_v58 = vpack.c.bf16 %v100_v56, %v100_v56 }
  0xf6   :  { %303 = vmatmul.mubr.bf16.vlgmr.msra.gmra.mrb[0].mxu1 %v101_v58 }
 0x1c9   :  { %v167_v3 = vpop.f32.mrb[0].mxu1 }
 0x1ca   :  { %v168_v4 = vadd.f32 %v255_v2, %v167_v3  ;;  %v304_v5 = vpop.f32.mrb[1].mxu1 }
 0x1cb   :  { %v170_v6 = vpop.f32.mrb[2].mxu1 }
 0x1cc   :  { %v173_v7 = vmax.f32 %v168_v4, 0.0  ;;  %v305_v0 = vpop.f32.mrb[3].mxu1 }
 0x1ce   :  { %v174_v8 = vpack.c.bf16 %v173_v7, %v173_v7 }
 0x1d0   :  { %323 = vmatmul.mubr.bf16.vlgmr.msra.gmra.mrb[4].mxu0 %v174_v8 }
 0x2a3   :  { %v240_v10 = vpop.f32.mrb[4].mxu0 }
 0x2a4   :  { %v241_v11 = vadd.f32 %v256_v9, %v240_v10  ;;  %v324_v12 = vpop.f32.mrb[5].mxu0 }
 0x2a5   :  { %v243_v13 = vpop.f32.mrb[6].mxu0 }
 0x2a6   :  { %247 = vst.msk [vmem:[%s554_s7] sm:$0xff] %vm246_vm2, %v241_v11  ;;  %v325_v14 = vpop.f32.mrb[7].mxu0 }
 0x2a7   :  { %252 = vsyncpa [#allocation3], 1 }

</bundles_post_ra>
